<compile_context>
chip_gen: v6e
topology: v6e:2x2x1
jax: 0.10.0
libtpu: 0.0.40
codegen_flags: <defaults>
</compile_context>

<pallas_src>
import functools

import jax
import jax.numpy as jnp
from jax.experimental import pallas as pl
from jax.experimental.pallas import tpu as pltpu


def _round_up(x, m):
    return ((x + m - 1) // m) * m


def _meta_output_kernel(x_ref, wh_ref, bh_ref, wc_ref, bc_ref,
                        scores_ref, hidden_ref):
    """Fused Linear -> ReLU -> Linear on one row tile.

    x_ref:      (TN, D)   input tile, original dtype (cast to compute dtype here)
    wh_ref:     (D, D)    hidden weight, (in, out) layout, compute dtype
    bh_ref:     (1, D)    hidden bias (f32)
    wc_ref:     (D, Kp)   cls_score weight, (in, out), zero-padded to Kp lanes
    bc_ref:     (1, Kp)   cls_score bias, zero-padded (f32)
    scores_ref: (TN, Kp)  output scores (lane-dense, unmasked stores)
    hidden_ref: (TN, D)   output hidden activations (post-ReLU)
    """
    # In-kernel operand cast (free under MXU/DMA slack) instead of a wrapper op.
    x = x_ref[...].astype(wh_ref.dtype)

    # hidden = ReLU(x @ W_h + b_h); MXU in operand dtype, f32 accumulation.
    h = jnp.dot(x, wh_ref[...], preferred_element_type=jnp.float32)
    h = jnp.maximum(h + bh_ref[...], 0.0)          # bias + ReLU in f32 vregs
    hidden_ref[...] = h.astype(hidden_ref.dtype)

    # scores = hidden @ W_c + b_c; output is 128-lane padded -> unmasked stores.
    s = jnp.dot(h.astype(wc_ref.dtype), wc_ref[...],
                preferred_element_type=jnp.float32)
    scores_ref[...] = (s + bc_ref[...]).astype(scores_ref.dtype)


def prepare_meta_output_params(w_hidden, b_hidden, w_cls, b_cls,
                               compute_dtype=None):
    """One-time weight prep (hoisted out of the per-call forward).

    Args:
      w_hidden: (D, D)   hidden Linear weight, stored as (in, out)
      b_hidden: (D,)     hidden Linear bias
      w_cls:    (D, K+1) cls_score Linear weight, stored as (in, out)
      b_cls:    (K+1,)   cls_score Linear bias
      compute_dtype: MXU operand dtype (e.g. jnp.bfloat16); None keeps f32.
    Returns:
      (wh, bh, wc, bc) ready-to-feed arrays: wc/bc are zero-padded to a
      128-lane multiple; biases are (1, .) float32.
    """
    D = w_hidden.shape[0]
    K1 = w_cls.shape[1]
    cdt = jnp.dtype(compute_dtype) if compute_dtype is not None else jnp.dtype(w_hidden.dtype)
    k_pad = _round_up(max(K1, 128), 128)

    wh = jnp.asarray(w_hidden).astype(cdt)
    wc = jnp.pad(jnp.asarray(w_cls), ((0, 0), (0, k_pad - K1))).astype(cdt)
    bh = jnp.asarray(b_hidden, dtype=jnp.float32).reshape(1, D)
    bc = jnp.pad(jnp.asarray(b_cls, dtype=jnp.float32), (0, k_pad - K1)).reshape(1, k_pad)
    return wh, bh, wc, bc


@functools.partial(jax.jit,
                   static_argnames=("num_scores", "tile_n", "hidden_dtype"))
def meta_output_layers_forward(x, wh, bh, wc, bc, *, num_scores,
                               tile_n=512, hidden_dtype=None):
    """Pallas implementation of MetaOutputLayers.forward.

    Args:
      x:          (N, C, H, W) or (N, D) input features
      wh, bh, wc, bc: outputs of prepare_meta_output_params()
      num_scores: true number of score columns (num_meta_classes + 1)
      tile_n:     max rows per grid step (512 amortizes per-step overhead)
      hidden_dtype: dtype of returned hidden activations (None -> x.dtype);
                    bf16 halves the dominant store traffic if tolerated.
    Returns:
      (scores, hidden): ((N, num_scores), (N, D))
    """
    if x.ndim > 2:
        x = x.reshape(x.shape[0], -1)          # torch.flatten(x, start_dim=1)
    N, D = x.shape
    k_pad = wc.shape[1]
    out_dtype = x.dtype
    hid_dt = jnp.dtype(hidden_dtype) if hidden_dtype is not None else out_dtype

    # Row alignment: 8 sublanes for 32-bit blocks, 16 when any row-tiled block
    # is 16-bit (bf16 sublane packing).
    min_item = min(jnp.dtype(out_dtype).itemsize, hid_dt.itemsize)
    row_align = 8 if min_item >= 4 else 16

    # Minimal row pad (<= row_align-1 rows); NO large wrapper pad.
    n_rows = _round_up(max(N, row_align), row_align)
    tile_cap = max(row_align, _round_up(int(tile_n), row_align))

    if n_rows <= tile_cap:
        # Single grid step: no per-step overhead, no duplicated weight fetch
        # across TensorCores (v7x) for small N.
        tile = n_rows
    else:
        # Large N: split into big tiles; per-step MXU work (tile*D^2) amortizes
        # the per-core weight DMAs, so megacore sharding pays off.
        tile = tile_cap
    grid = (pl.cdiv(n_rows, tile),)

    x_p = x if n_rows == N else jnp.pad(x, ((0, n_rows - N), (0, 0)))

    # Resident (constant index map) operands: single-buffered.
    const_mode = pl.Buffered(1)

    # VMEM estimate: single-buffered weights + double-buffered row tiles.
    w_bytes = (wh.size * jnp.dtype(wh.dtype).itemsize
               + wc.size * jnp.dtype(wc.dtype).itemsize
               + (bh.size + bc.size) * 4)
    act_bytes = 2 * tile * (D * jnp.dtype(out_dtype).itemsize
                            + D * hid_dt.itemsize
                            + k_pad * jnp.dtype(out_dtype).itemsize)
    vmem_est = w_bytes + act_bytes
    cp_kwargs = dict(dimension_semantics=("parallel",))
    if vmem_est > 30 * 1024 * 1024:
        cp_kwargs["vmem_limit_bytes"] = min(int(vmem_est * 5 // 4),
                                            120 * 1024 * 1024)

    cost = pl.CostEstimate(
        flops=2 * n_rows * D * D + 2 * n_rows * D * k_pad,
        transcendentals=0,
        bytes_accessed=(x_p.size * jnp.dtype(out_dtype).itemsize
                        + w_bytes
                        + n_rows * D * hid_dt.itemsize
                        + n_rows * k_pad * jnp.dtype(out_dtype).itemsize),
    )

    scores_p, hidden_p = pl.pallas_call(
        _meta_output_kernel,
        out_shape=(
            jax.ShapeDtypeStruct((n_rows, k_pad), out_dtype),
            jax.ShapeDtypeStruct((n_rows, D), hid_dt),
        ),
        grid_spec=pltpu.PrefetchScalarGridSpec(
            num_scalar_prefetch=0,
            grid=grid,
            in_specs=[
                pl.BlockSpec((tile, D), lambda i: (i, 0)),       # x row tile
                pl.BlockSpec((D, D), lambda i: (0, 0),           # W_h resident
                             pipeline_mode=const_mode),
                pl.BlockSpec((1, D), lambda i: (0, 0),           # b_h
                             pipeline_mode=const_mode),
                pl.BlockSpec((D, k_pad), lambda i: (0, 0),       # W_c resident
                             pipeline_mode=const_mode),
                pl.BlockSpec((1, k_pad), lambda i: (0, 0),       # b_c
                             pipeline_mode=const_mode),
            ],
            out_specs=[
                pl.BlockSpec((tile, k_pad), lambda i: (i, 0)),   # scores (lane-dense)
                pl.BlockSpec((tile, D), lambda i: (i, 0)),       # hidden
            ],
        ),
        compiler_params=pltpu.CompilerParams(**cp_kwargs),
        cost_estimate=cost,
    )(x_p, wh, bh, wc, bc)

    # Strip row / lane padding back to the module's output shapes (slices only
    # where shapes actually differ).
    scores = scores_p[:N, :num_scores] if (n_rows != N or num_scores != k_pad) else scores_p
    hidden = hidden_p[:N, :] if n_rows != N else hidden_p
    return scores, hidden


def _reference_forward(x, w_hidden, b_hidden, w_cls, b_cls, compute_dtype=None):
    """Plain-JAX reference with the same operand-dtype convention."""
    if x.ndim > 2:
        x = x.reshape(x.shape[0], -1)
    cdt = jnp.dtype(compute_dtype) if compute_dtype is not None else x.dtype
    h = jnp.dot(x.astype(cdt), w_hidden.astype(cdt),
                preferred_element_type=jnp.float32) + b_hidden
    h = jnp.maximum(h, 0.0)
    s = jnp.dot(h.astype(cdt), w_cls.astype(cdt),
                preferred_element_type=jnp.float32) + b_cls
    return s.astype(x.dtype), h.astype(x.dtype)


if __name__ == "__main__":
    key = jax.random.PRNGKey(0)

    # Module config (ShapeSpec(channels=4, height=8, width=8) -> D = 256;
    # num_meta_classes = 7 -> scores dim K+1 = 8).  N = number of ROIs.
    N, C, H, W = 40, 4, 8, 8
    D = C * H * W
    num_meta_classes = 7
    K1 = num_meta_classes + 1

    kx, kwh, kwc = jax.random.split(key, 3)

    # ROI-pooled features, NCHW like PyTorch.
    x = jax.random.normal(kx, (N, C, H, W), dtype=jnp.float32)

    # Parameters, initialized like the module's __init__:
    #   nn.init.normal_(weight, std=0.01), bias = 0.  Stored pre-transposed (in, out).
    w_hidden = 0.01 * jax.random.normal(kwh, (D, D), dtype=jnp.float32)
    b_hidden = jnp.zeros((D,), dtype=jnp.float32)
    w_cls = 0.01 * jax.random.normal(kwc, (D, K1), dtype=jnp.float32)
    b_cls = jnp.zeros((K1,), dtype=jnp.float32)

    # --- f32 path (exact semantics); weights prepared once, single grid step ---
    params_f32 = prepare_meta_output_params(w_hidden, b_hidden, w_cls, b_cls)
    scores, hidden = meta_output_layers_forward(x, *params_f32, num_scores=K1)
    jax.block_until_ready((scores, hidden))
    ref_s, ref_h = _reference_forward(x, w_hidden, b_hidden, w_cls, b_cls)
    assert scores.shape == (N, K1) and hidden.shape == (N, D)
    assert jnp.allclose(scores, ref_s, atol=1e-4, rtol=1e-4)
    assert jnp.allclose(hidden, ref_h, atol=1e-4, rtol=1e-4)

    # --- bf16 operand path (f32 accumulation) for MXU throughput / half HBM ---
    params_bf16 = prepare_meta_output_params(
        w_hidden, b_hidden, w_cls, b_cls, compute_dtype=jnp.bfloat16)
    scores_bf, hidden_bf = meta_output_layers_forward(x, *params_bf16, num_scores=K1)
    jax.block_until_ready((scores_bf, hidden_bf))
    ref_sb, ref_hb = _reference_forward(x, w_hidden, b_hidden, w_cls, b_cls,
                                        compute_dtype=jnp.bfloat16)
    assert jnp.allclose(scores_bf, ref_sb, atol=1e-3, rtol=1e-2)
    assert jnp.allclose(hidden_bf, ref_hb, atol=1e-3, rtol=1e-2)

    # --- ragged ROI count (not a multiple of 8): minimal <8-row pad internally ---
    Nr = 27
    scores_r, hidden_r = meta_output_layers_forward(x[:Nr], *params_f32, num_scores=K1)
    jax.block_until_ready((scores_r, hidden_r))
    ref_sr, ref_hr = _reference_forward(x[:Nr], w_hidden, b_hidden, w_cls, b_cls)
    assert scores_r.shape == (Nr, K1) and hidden_r.shape == (Nr, D)
    assert jnp.allclose(scores_r, ref_sr, atol=1e-4, rtol=1e-4)
    assert jnp.allclose(hidden_r, ref_hr, atol=1e-4, rtol=1e-4)

    # --- multi-step grid with a partial last block (no wrapper-side big pad) ---
    scores_m, hidden_m = meta_output_layers_forward(x, *params_f32, num_scores=K1,
                                                    tile_n=16)
    jax.block_until_ready((scores_m, hidden_m))
    assert scores_m.shape == (N, K1) and hidden_m.shape == (N, D)
    assert jnp.allclose(scores_m, ref_s, atol=1e-4, rtol=1e-4)
    assert jnp.allclose(hidden_m, ref_h, atol=1e-4, rtol=1e-4)

    print("KERNEL_OK")
</pallas_src>

<mosaic_0001>
module attributes {stable_mosaic.version = 11 : i64} {
  func.func @_meta_output_kernel(%arg0: i32, %arg1: memref<40x256xf32, #tpu.memory_space<vmem>>, %arg2: memref<256x256xf32, #tpu.memory_space<vmem>>, %arg3: memref<1x256xf32, #tpu.memory_space<vmem>>, %arg4: memref<256x128xf32, #tpu.memory_space<vmem>>, %arg5: memref<1x128xf32, #tpu.memory_space<vmem>>, %arg6: memref<40x128xf32, #tpu.memory_space<vmem>>, %arg7: memref<40x256xf32, #tpu.memory_space<vmem>>) attributes {dimension_semantics = [#tpu.dimension_semantics<parallel>], iteration_bounds = array<i64: 1>, scalar_prefetch = 0 : i64, scratch_operands = 0 : i64, tpu.core_type = #tpu.core_type<tc>, window_params = [{transform_indices = @transform_0, window_bounds = array<i64: 40, 256>}, {pipeline_mode = #tpu.pipeline_mode<synchronous>, transform_indices = @transform_1, window_bounds = array<i64: 256, 256>}, {pipeline_mode = #tpu.pipeline_mode<synchronous>, transform_indices = @transform_2, window_bounds = array<i64: 1, 256>}, {pipeline_mode = #tpu.pipeline_mode<synchronous>, transform_indices = @transform_3, window_bounds = array<i64: 256, 128>}, {pipeline_mode = #tpu.pipeline_mode<synchronous>, transform_indices = @transform_4, window_bounds = array<i64: 1, 128>}, {transform_indices = @transform_5, window_bounds = array<i64: 40, 128>}, {transform_indices = @transform_6, window_bounds = array<i64: 40, 256>}]} {
    %c0 = arith.constant 0 : index
    %c0_0 = arith.constant 0 : index
    %0 = vector.load %arg1[%c0, %c0_0] : memref<40x256xf32, #tpu.memory_space<vmem>>, vector<40x256xf32>
    %c0_1 = arith.constant 0 : index
    %c0_2 = arith.constant 0 : index
    %1 = vector.load %arg2[%c0_1, %c0_2] : memref<256x256xf32, #tpu.memory_space<vmem>>, vector<256x256xf32>
    %cst = arith.constant dense<0.000000e+00> : vector<40x256xf32>
    %2 = tpu.matmul %0, %1, %cst {dimension_numbers = #tpu.dot_dimension_numbers<[1], [0], [0], [1], [0, 0, 1, 1], [], []>} : vector<40x256xf32>, vector<256x256xf32>, vector<40x256xf32> -> vector<40x256xf32>
    %c0_3 = arith.constant 0 : index
    %c0_4 = arith.constant 0 : index
    %3 = vector.load %arg3[%c0_3, %c0_4] : memref<1x256xf32, #tpu.memory_space<vmem>>, vector<1x256xf32>
    %4 = vector.broadcast %3 : vector<1x256xf32> to vector<40x256xf32>
    %5 = arith.addf %2, %4 : vector<40x256xf32>
    %cst_5 = arith.constant 0.000000e+00 : f32
    %6 = vector.broadcast %cst_5 : f32 to vector<40x256xf32>
    %7 = arith.maximumf %5, %6 : vector<40x256xf32>
    %c0_6 = arith.constant 0 : index
    %c0_7 = arith.constant 0 : index
    %8 = vector.load %arg7[%c0_6, %c0_7] : memref<40x256xf32, #tpu.memory_space<vmem>>, vector<40x256xf32>
    tpu.vector_store %arg7[%c0_6, %c0_7], %7 {strides = array<i32>} : memref<40x256xf32, #tpu.memory_space<vmem>>, vector<40x256xf32>,
    %c0_8 = arith.constant 0 : index
    %c0_9 = arith.constant 0 : index
    %9 = vector.load %arg4[%c0_8, %c0_9] : memref<256x128xf32, #tpu.memory_space<vmem>>, vector<256x128xf32>
    %cst_10 = arith.constant dense<0.000000e+00> : vector<40x128xf32>
    %10 = tpu.matmul %7, %9, %cst_10 {dimension_numbers = #tpu.dot_dimension_numbers<[1], [0], [0], [1], [0, 0, 1, 1], [], []>} : vector<40x256xf32>, vector<256x128xf32>, vector<40x128xf32> -> vector<40x128xf32>
    %c0_11 = arith.constant 0 : index
    %c0_12 = arith.constant 0 : index
    %11 = vector.load %arg5[%c0_11, %c0_12] : memref<1x128xf32, #tpu.memory_space<vmem>>, vector<1x128xf32>
    %12 = vector.broadcast %11 : vector<1x128xf32> to vector<40x128xf32>
    %13 = arith.addf %10, %12 : vector<40x128xf32>
    %c0_13 = arith.constant 0 : index
    %c0_14 = arith.constant 0 : index
    %14 = vector.load %arg6[%c0_13, %c0_14] : memref<40x128xf32, #tpu.memory_space<vmem>>, vector<40x128xf32>
    tpu.vector_store %arg6[%c0_13, %c0_14], %13 {strides = array<i32>} : memref<40x128xf32, #tpu.memory_space<vmem>>, vector<40x128xf32>,
    return
  }
  func.func @transform_0(%arg0: i32) -> (i32, i32) {
    %c0_i32 = arith.constant 0 : i32
    %c0_i32_0 = arith.constant 0 : i32
    return %arg0, %c0_i32 : i32, i32
  }
  func.func @transform_1(%arg0: i32) -> (i32, i32) {
    %c0_i32 = arith.constant 0 : i32
    %c0_i32_0 = arith.constant 0 : i32
    %c0_i32_1 = arith.constant 0 : i32
    return %c0_i32, %c0_i32_0 : i32, i32
  }
  func.func @transform_2(%arg0: i32) -> (i32, i32) {
    %c0_i32 = arith.constant 0 : i32
    %c0_i32_0 = arith.constant 0 : i32
    %c0_i32_1 = arith.constant 0 : i32
    return %c0_i32, %c0_i32_0 : i32, i32
  }
  func.func @transform_3(%arg0: i32) -> (i32, i32) {
    %c0_i32 = arith.constant 0 : i32
    %c0_i32_0 = arith.constant 0 : i32
    %c0_i32_1 = arith.constant 0 : i32
    return %c0_i32, %c0_i32_0 : i32, i32
  }
  func.func @transform_4(%arg0: i32) -> (i32, i32) {
    %c0_i32 = arith.constant 0 : i32
    %c0_i32_0 = arith.constant 0 : i32
    %c0_i32_1 = arith.constant 0 : i32
    return %c0_i32, %c0_i32_0 : i32, i32
  }
  func.func @transform_5(%arg0: i32) -> (i32, i32) {
    %c0_i32 = arith.constant 0 : i32
    %c0_i32_0 = arith.constant 0 : i32
    return %arg0, %c0_i32 : i32, i32
  }
  func.func @transform_6(%arg0: i32) -> (i32, i32) {
    %c0_i32 = arith.constant 0 : i32
    %c0_i32_0 = arith.constant 0 : i32
    return %arg0, %c0_i32 : i32, i32
  }
}

</mosaic_0001>

<bundles_post_ra>
// kernel: meta_output_layers_forward.1
= control target key start
LH: loop header
LB: loop body
LE: loop exit
PB: predicated region body
PF: predicated region fallthrough
CT: control target
= control target key end

     0   :  { %12 = vsyncpa [#allocation3], 0  ;;  %s687_s0 = inlined_call_operand.vmem [shape: f32[40,256], index: 0, kind: input, shape index: {}]   ;;  %s688_s1 = inlined_call_operand.hbm [shape: f32[256,256], index: 1, kind: input, shape index: {}]   ;;  %s689_s2 = inlined_call_operand.vmem [shape: f32[1,256], index: 2, kind: input, shape index: {}]   ;;  %s690_s3 = inlined_call_operand.vmem [shape: f32[256,128], index: 3, kind: input, shape index: {}]   ;;  %s691_s4 = inlined_call_operand.vmem [shape: f32[1,128], index: 4, kind: input, shape index: {}]   ;;  %s692_s5 = inlined_call_operand.vmem [shape: f32[40,128], index: 5, kind: output, shape index: {0}]   ;;  %s693_s6 = inlined_call_operand.hbm [shape: f32[40,256], index: 6, kind: output, shape index: {1}]  }
   0x1   :  { %13 = vsyncpa [#allocation4], 0  ;;  %s489_s21 = smov [#allocation2]  }
   0x2   :  { %s21_s22 = sshll.u32 %s489_s21, 4  ;;  %s22_s22 = int_to_ptr.vmem [resolvable:$true] %s21_s22 }
   0x3   :  { %s453_s23 = scalar_lea.vmem %s22_s22, 8192  ;;  %p458_p1 = scmp.lt.s32.totalorder %s22_s22, %s22_s22 }
   0x4   :  { %p454_p0 = scmp.ne.s32.totalorder %s22_s22, %s453_s23  ;;  %p459_p2 = scmp.lt.s32.totalorder %s453_s23, %s453_s23 }
   0x6   :  { %p460_p3 = por %p459_p2, %p458_p1 }
   0x8   :  { %p461_p4 = pnand %p460_p3, %p454_p0 }
   0xa   :  { %464 = shalt.err (!%p461_p4)
}
   0xb   :  { %s490_s24 = smov 256   ;;  %s491_s25 = smov 16  }
   0xc   :  { %27 = dma.hbm_to_vmem [thread:$0]  %s688_s1, 8192, %s22_s22, [#allocation3], %s490_s24, %s490_s24, %s491_s25  }
   0xd   :  { %485 = dma.done.wait [#allocation3], 8192  }
   0xe   :  { %486 = vsyncadd [#allocation3], 4294959104  ;;  %v78_v0 = vld [vmem:[#allocation2 + $0xf8] sm:$0xff]  ;;  %v77_v1 = vld [vmem:[#allocation2 + $0xf0] sm:$0xff] }
   0xf   :  { %v76_v2 = vld [vmem:[#allocation2 + $0xe8] sm:$0xff]  ;;  %123 = vmatprep.subr.mxu0 %v78_v0  ;;  %v75_v3 = vld [vmem:[#allocation2 + $0xe0] sm:$0xff]  ;;  %v74_v4 = vld [vmem:[#allocation2 + $0xd8] sm:$0xff] }
  0x10   :  { %124 = vmatpush1.msra.mxu0 %v77_v1  ;;  %v73_v5 = vld [vmem:[#allocation2 + $0xd0] sm:$0xff]  ;;  %v72_v6 = vld [vmem:[#allocation2 + $0xc8] sm:$0xff]  ;;  %v71_v7 = vld [vmem:[#allocation2 + $0xc0] sm:$0xff] }
  0x11   :  { %125 = vmatprep.subr.mxu0 %v76_v2  ;;  %v70_v8 = vld [vmem:[#allocation2 + $0xb8] sm:$0xff]  ;;  %v69_v9 = vld [vmem:[#allocation2 + $0xb0] sm:$0xff]  ;;  %v68_v10 = vld [vmem:[#allocation2 + $0xa8] sm:$0xff] }
  0x12   :  { %126 = vmatpush1.msra.mxu0 %v75_v3  ;;  %v67_v11 = vld [vmem:[#allocation2 + $0xa0] sm:$0xff]  ;;  %v66_v12 = vld [vmem:[#allocation2 + $0x98] sm:$0xff]  ;;  %v65_v13 = vld [vmem:[#allocation2 + $0x90] sm:$0xff] }
  0x13   :  { %127 = vmatprep.subr.mxu0 %v74_v4  ;;  %v64_v14 = vld [vmem:[#allocation2 + $0x88] sm:$0xff]  ;;  %v63_v15 = vld [vmem:[#allocation2 + $0x80] sm:$0xff]  ;;  %v62_v16 = vld [vmem:[#allocation2 + $0x78] sm:$0xff] }
  0x14   :  { %128 = vmatpush1.msra.mxu0 %v73_v5  ;;  %v61_v17 = vld [vmem:[#allocation2 + $0x70] sm:$0xff]  ;;  %v60_v18 = vld [vmem:[#allocation2 + $0x68] sm:$0xff]  ;;  %v59_v19 = vld [vmem:[#allocation2 + $0x60] sm:$0xff] }
  0x15   :  { %129 = vmatprep.subr.mxu0 %v72_v6  ;;  %v58_v20 = vld [vmem:[#allocation2 + $0x58] sm:$0xff]  ;;  %v57_v21 = vld [vmem:[#allocation2 + $0x50] sm:$0xff]  ;;  %v56_v22 = vld [vmem:[#allocation2 + $0x48] sm:$0xff] }
  0x16   :  { %130 = vmatpush1.msra.mxu0 %v71_v7  ;;  %v55_v23 = vld [vmem:[#allocation2 + $0x40] sm:$0xff]  ;;  %v38_v24 = vld [vmem:[%s687_s0 + $0x8] sm:$0xff]  ;;  %v54_v25 = vld [vmem:[#allocation2 + $0x38] sm:$0xff] }
  0x17   :  { %131 = vmatprep.subr.mxu0 %v70_v8  ;;  %187 = vmatprep.mubr.f32.mxu0 %v38_v24  ;;  %v53_v26 = vld [vmem:[#allocation2 + $0x30] sm:$0xff]  ;;  %v52_v27 = vld [vmem:[#allocation2 + $0x28] sm:$0xff]  ;;  %v51_v28 = vld [vmem:[#allocation2 + $0x20] sm:$0xff] }
  0x18   :  { %132 = vmatpush1.msra.mxu0 %v69_v9  ;;  %v269_v29 = vld [vmem:[%s690_s3 + $0xf8] sm:$0xff]  ;;  %v268_v31 = vld [vmem:[%s690_s3 + $0xf0] sm:$0xff]  ;;  %v267_v34 = vld [vmem:[%s690_s3 + $0xe8] sm:$0xff] }
  0x19   :  { %133 = vmatprep.subr.mxu0 %v68_v10  ;;  %394 = vmatprep.subr.mxu1 %v269_v29  ;;  %v253_v30 = vld [vmem:[%s690_s3 + $0x78] sm:$0xff]  ;;  %v252_v32 = vld [vmem:[%s690_s3 + $0x70] sm:$0xff]  ;;  %v251_v36 = vld [vmem:[%s690_s3 + $0x68] sm:$0xff] }
  0x1a   :  { %134 = vmatpush1.msra.mxu0 %v67_v11  ;;  %v50_v33 = vld [vmem:[#allocation2 + $0x18] sm:$0xff]  ;;  %395 = vmatpush3.msra.mxu1 %v253_v30  ;;  %v49_v35 = vld [vmem:[#allocation2 + $0x10] sm:$0xff]  ;;  %v48_v37 = vld [vmem:[#allocation2 + $0x8] sm:$0xff] }
  0x1b   :  { %135 = vmatprep.subr.mxu0 %v66_v12  ;;  %396 = vmatprep.subr.mxu1 %v268_v31  ;;  %v266_v38 = vld [vmem:[%s690_s3 + $0xe0] sm:$0xff]  ;;  %v110_v41 = vld [vmem:[#allocation2 + $0x1f8] sm:$0xff]  ;;  %v109_v43 = vld [vmem:[#allocation2 + $0x1f0] sm:$0xff] }
  0x1c   :  { %136 = vmatpush1.msra.mxu0 %v65_v13  ;;  %397 = vmatpush3.msra.mxu1 %v252_v32  ;;  %v47_v39 = vld [vmem:[#allocation2] sm:$0xff]  ;;  %v265_v42 = vld [vmem:[%s690_s3 + $0xd8] sm:$0xff]  ;;  %v108_v45 = vld [vmem:[#allocation2 + $0x1e8] sm:$0xff] }
  0x1d   :  { %137 = vmatprep.subr.mxu0 %v64_v14  ;;  %398 = vmatprep.subr.mxu1 %v267_v34  ;;  %v250_v40 = vld [vmem:[%s690_s3 + $0x60] sm:$0xff]  ;;  %v249_v44 = vld [vmem:[%s690_s3 + $0x58] sm:$0xff]  ;;  %v264_v46 = vld [vmem:[%s690_s3 + $0xd0] sm:$0xff] }
  0x1e   :  { %138 = vmatpush1.msra.mxu0 %v63_v15  ;;  %399 = vmatpush3.msra.mxu1 %v251_v36  ;;  %v107_v47 = vld [vmem:[#allocation2 + $0x1e0] sm:$0xff]  ;;  %v248_v48 = vld [vmem:[%s690_s3 + $0x50] sm:$0xff]  ;;  %v106_v49 = vld [vmem:[#allocation2 + $0x1d8] sm:$0xff] }
  0x1f   :  { %139 = vmatprep.subr.mxu0 %v62_v16  ;;  %400 = vmatprep.subr.mxu1 %v266_v38  ;;  %v263_v50 = vld [vmem:[%s690_s3 + $0xc8] sm:$0xff]  ;;  %v105_v51 = vld [vmem:[#allocation2 + $0x1d0] sm:$0xff]  ;;  %v262_v54 = vld [vmem:[%s690_s3 + $0xc0] sm:$0xff] }
  0x20   :  { %140 = vmatpush1.msra.mxu0 %v61_v17  ;;  %401 = vmatpush3.msra.mxu1 %v250_v40  ;;  %v247_v52 = vld [vmem:[%s690_s3 + $0x48] sm:$0xff]  ;;  %v103_v55 = vld [vmem:[#allocation2 + $0x1c0] sm:$0xff]  ;;  %v102_v57 = vld [vmem:[#allocation2 + $0x1b8] sm:$0xff] }
  0x21   :  { %141 = vmatprep.subr.mxu0 %v60_v18  ;;  %402 = vmatprep.subr.mxu1 %v265_v42  ;;  %v104_v53 = vld [vmem:[#allocation2 + $0x1c8] sm:$0xff]  ;;  %v246_v56 = vld [vmem:[%s690_s3 + $0x40] sm:$0xff]  ;;  %v261_v58 = vld [vmem:[%s690_s3 + $0xb8] sm:$0xff]  ;;  %v113_v42 = vlaneseq }
  0x22   :  { %142 = vmatpush1.msra.mxu0 %v59_v19  ;;  %403 = vmatpush3.msra.mxu1 %v249_v44  ;;  %v101_v59 = vld [vmem:[#allocation2 + $0x1b0] sm:$0xff]  ;;  %v245_v60 = vld [vmem:[%s690_s3 + $0x38] sm:$0xff]  ;;  %v100_v61 = vld [vmem:[#allocation2 + $0x1a8] sm:$0xff] }
  0x23   :  { %143 = vmatprep.subr.mxu0 %v58_v20  ;;  %404 = vmatprep.subr.mxu1 %v264_v46  ;;  %v260_v62 = vld [vmem:[%s690_s3 + $0xb0] sm:$0xff]  ;;  %v99_v63 = vld [vmem:[#allocation2 + $0x1a0] sm:$0xff]  ;;  %v98_v1 = vld [vmem:[#allocation2 + $0x198] sm:$0xff] }
  0x24   :  { %144 = vmatpush1.msra.mxu0 %v57_v21  ;;  %405 = vmatpush3.msra.mxu1 %v248_v48  ;;  %v244_v0 = vld [vmem:[%s690_s3 + $0x30] sm:$0xff]  ;;  %v259_v2 = vld [vmem:[%s690_s3 + $0xa8] sm:$0xff]  ;;  %v258_v6 = vld [vmem:[%s690_s3 + $0xa0] sm:$0xff] }
  0x25   :  { %145 = vmatprep.subr.mxu0 %v56_v22  ;;  %406 = vmatprep.subr.mxu1 %v263_v50  ;;  %v97_v3 = vld [vmem:[#allocation2 + $0x190] sm:$0xff]  ;;  %v243_v4 = vld [vmem:[%s690_s3 + $0x28] sm:$0xff]  ;;  %v95_v7 = vld [vmem:[#allocation2 + $0x180] sm:$0xff] }
  0x26   :  { %146 = vmatpush1.msra.mxu0 %v55_v23  ;;  %407 = vmatpush3.msra.mxu1 %v247_v52  ;;  %v96_v5 = vld [vmem:[#allocation2 + $0x188] sm:$0xff]  ;;  %v242_v8 = vld [vmem:[%s690_s3 + $0x20] sm:$0xff]  ;;  %v94_v9 = vld [vmem:[#allocation2 + $0x178] sm:$0xff] }
  0x27   :  { %147 = vmatprep.subr.mxu0 %v54_v25  ;;  %408 = vmatprep.subr.mxu1 %v262_v54  ;;  %v93_v10 = vld [vmem:[#allocation2 + $0x170] sm:$0xff]  ;;  %v92_v11 = vld [vmem:[#allocation2 + $0x168] sm:$0xff]  ;;  %v91_v12 = vld [vmem:[#allocation2 + $0x160] sm:$0xff] }
  0x28   :  { %148 = vmatpush1.msra.mxu0 %v53_v26  ;;  %409 = vmatpush3.msra.mxu1 %v246_v56  ;;  %v90_v13 = vld [vmem:[#allocation2 + $0x158] sm:$0xff]  ;;  %v89_v14 = vld [vmem:[#allocation2 + $0x150] sm:$0xff]  ;;  %v88_v15 = vld [vmem:[#allocation2 + $0x148] sm:$0xff] }
  0x29   :  { %149 = vmatprep.subr.mxu0 %v52_v27  ;;  %410 = vmatprep.subr.mxu1 %v261_v58  ;;  %v87_v16 = vld [vmem:[#allocation2 + $0x140] sm:$0xff]  ;;  %v86_v17 = vld [vmem:[#allocation2 + $0x138] sm:$0xff]  ;;  %v85_v18 = vld [vmem:[#allocation2 + $0x130] sm:$0xff] }
  0x2a   :  { %150 = vmatpush1.msra.mxu0 %v51_v28  ;;  %411 = vmatpush3.msra.mxu1 %v245_v60  ;;  %v84_v19 = vld [vmem:[#allocation2 + $0x128] sm:$0xff]  ;;  %v83_v20 = vld [vmem:[#allocation2 + $0x120] sm:$0xff]  ;;  %v82_v21 = vld [vmem:[#allocation2 + $0x118] sm:$0xff] }
  0x2b   :  { %151 = vmatprep.subr.mxu0 %v50_v33  ;;  %412 = vmatprep.subr.mxu1 %v260_v62  ;;  %v81_v22 = vld [vmem:[#allocation2 + $0x110] sm:$0xff]  ;;  %v80_v23 = vld [vmem:[#allocation2 + $0x108] sm:$0xff]  ;;  %v79_v24 = vld [vmem:[#allocation2 + $0x100] sm:$0xff] }
  0x2c   :  { %152 = vmatpush1.msra.mxu0 %v49_v35  ;;  %413 = vmatpush3.msra.mxu1 %v244_v0  ;;  %v37_v25 = vld [vmem:[%s687_s0] sm:$0xff]  ;;  %v40_v26 = vld [vmem:[%s687_s0 + $0x18] sm:$0xff]  ;;  %v39_v27 = vld [vmem:[%s687_s0 + $0x10] sm:$0xff] }
  0x2d   :  { %153 = vmatprep.subr.mxu0 %v48_v37  ;;  %414 = vmatprep.subr.mxu1 %v259_v2  ;;  %v42_v28 = vld [vmem:[%s687_s0 + $0x28] sm:$0xff]  ;;  %v41_v29 = vld [vmem:[%s687_s0 + $0x20] sm:$0xff]  ;;  %v44_v30 = vld [vmem:[%s687_s0 + $0x38] sm:$0xff] }
  0x2e   :  { %154 = vmatpush1.msra.mxu0 %v47_v39  ;;  %415 = vmatpush3.msra.mxu1 %v243_v4  ;;  %v43_v31 = vld [vmem:[%s687_s0 + $0x30] sm:$0xff]  ;;  %v46_v32 = vld [vmem:[%s687_s0 + $0x48] sm:$0xff]  ;;  %v45_v33 = vld [vmem:[%s687_s0 + $0x40] sm:$0xff] }
  0x2f   :  { %155 = vmatprep.subr.mxu0 %v110_v41  ;;  %416 = vmatprep.subr.mxu1 %v258_v6  ;;  %v257_v34 = vld [vmem:[%s690_s3 + $0x98] sm:$0xff]  ;;  %v256_v36 = vld [vmem:[%s690_s3 + $0x90] sm:$0xff]  ;;  %v255_v38 = vld [vmem:[%s690_s3 + $0x88] sm:$0xff] }
  0x30   :  { %156 = vmatpush2.msra.mxu0 %v109_v43  ;;  %417 = vmatpush3.msra.mxu1 %v242_v8  ;;  %v241_v35 = vld [vmem:[%s690_s3 + $0x18] sm:$0xff]  ;;  %v240_v37 = vld [vmem:[%s690_s3 + $0x10] sm:$0xff]  ;;  %v239_v39 = vld [vmem:[%s690_s3 + $0x8] sm:$0xff]  ;;  %v114_v43 = vshrl.u32 %v113_v42, 7 }
  0x31   :  { %157 = vmatprep.subr.mxu0 %v108_v45  ;;  %418 = vmatprep.subr.mxu1 %v257_v34  ;;  %v254_v40 = vld [vmem:[%s690_s3 + $0x80] sm:$0xff] }
  0x32   :  { %158 = vmatpush2.msra.mxu0 %v107_v47  ;;  %419 = vmatpush3.msra.mxu1 %v241_v35  ;;  %v238_v41 = vld [vmem:[%s690_s3] sm:$0xff]  ;;  %v115_v44 = vsub.s32 0, %v114_v43  ;;  %v119_v46 = vsub.s32 1, %v114_v43 }
  0x33   :  { %159 = vmatprep.subr.mxu0 %v106_v49  ;;  %420 = vmatprep.subr.mxu1 %v256_v36  ;;  %v111_v45 = vld [vmem:[%s689_s2] sm:$0x3]  ;;  %s492_s2 = smov [#allocation5]  }
  0x34   :  { %160 = vmatpush2.msra.mxu0 %v105_v51  ;;  %421 = vmatpush3.msra.mxu1 %v240_v37  ;;  %v116_v47 = vrot.slane %v111_v45, %v115_v44  ;;  %v120_v48 = vrot.slane %v111_v45, %v119_v46  ;;  %s379_s3 = sshll.u32 %s492_s2, 4  ;;  %s380_s3 = int_to_ptr.vmem [resolvable:$true] %s379_s3 }
  0x35   :  { %161 = vmatprep.subr.mxu0 %v104_v53  ;;  %422 = vmatprep.subr.mxu1 %v255_v38  ;;  %s465_s19 = scalar_lea.vmem %s380_s3, 1280  ;;  %p470_p6 = scmp.lt.s32.totalorder %s380_s3, %s380_s3 }
  0x36   :  { %162 = vmatpush2.msra.mxu0 %v103_v55  ;;  %423 = vmatpush3.msra.mxu1 %v239_v39  ;;  %p466_p5 = scmp.ne.s32.totalorder %s380_s3, %s465_s19  ;;  %p471_p7 = scmp.lt.s32.totalorder %s465_s19, %s465_s19 }
  0x37   :  { %163 = vmatprep.subr.mxu0 %v102_v57  ;;  %424 = vmatprep.subr.mxu1 %v254_v40 }
  0x38   :  { %164 = vmatpush2.msra.mxu0 %v101_v59  ;;  %425 = vmatpush3.msra.mxu1 %v238_v41  ;;  %p472_p8 = por %p471_p7, %p470_p6 }
  0x39   :  { %165 = vmatprep.subr.mxu0 %v100_v61 }
  0x3a   :  { %166 = vmatpush2.msra.mxu0 %v99_v63  ;;  %p473_p9 = pnand %p472_p8, %p466_p5 }
  0x3b   :  { %167 = vmatprep.subr.mxu0 %v98_v1 }
  0x3c   :  { %168 = vmatpush2.msra.mxu0 %v97_v3 }
  0x3d   :  { %169 = vmatprep.subr.mxu0 %v96_v5 }
  0x3e   :  { %170 = vmatpush2.msra.mxu0 %v95_v7 }
  0x3f   :  { %171 = vmatprep.subr.mxu0 %v94_v9 }
  0x40   :  { %172 = vmatpush2.msra.mxu0 %v93_v10 }
  0x41   :  { %173 = vmatprep.subr.mxu0 %v92_v11 }
  0x42   :  { %174 = vmatpush2.msra.mxu0 %v91_v12 }
  0x43   :  { %175 = vmatprep.subr.mxu0 %v90_v13 }
  0x44   :  { %176 = vmatpush2.msra.mxu0 %v89_v14 }
  0x45   :  { %177 = vmatprep.subr.mxu0 %v88_v15 }
  0x46   :  { %178 = vmatpush2.msra.mxu0 %v87_v16 }
  0x47   :  { %179 = vmatprep.subr.mxu0 %v86_v17 }
  0x48   :  { %180 = vmatpush2.msra.mxu0 %v85_v18 }
  0x49   :  { %181 = vmatprep.subr.mxu0 %v84_v19 }
  0x4a   :  { %182 = vmatpush2.msra.mxu0 %v83_v20 }
  0x4b   :  { %183 = vmatprep.subr.mxu0 %v82_v21 }
  0x4c   :  { %184 = vmatpush2.msra.mxu0 %v81_v22 }
  0x4d   :  { %185 = vmatprep.subr.mxu0 %v80_v23 }
  0x4e   :  { %186 = vmatpush2.msra.mxu0 %v79_v24 }
  0x4f   :  { %188 = vmatmul.mubr.f32.vlgmr.msra.gmra.mxu0 %v37_v25 }
  0x50   :  { %193 = vmatprep.mubr.f32.mxu0 %v40_v26 }
  0x53   :  { %194 = vmatmul.mubr.f32.gmra.mxu0 %v39_v27 }
  0x54   :  { %199 = vmatprep.mubr.f32.mxu0 %v42_v28 }
  0x57   :  { %200 = vmatmul.mubr.f32.gmra.mxu0 %v41_v29 }
  0x58   :  { %205 = vmatprep.mubr.f32.mxu0 %v44_v30 }
  0x5b   :  { %206 = vmatmul.mubr.f32.gmra.mxu0 %v43_v31 }
  0x5c   :  { %211 = vmatprep.mubr.f32.mxu0 %v46_v32 }
  0x5f   :  { %212 = vmatmul.mubr.f32.gmra.mxu0 %v45_v33 }
 0x10f   :  { %v189_v49 = vpop.f32.mrf.mxu0 }
 0x110   :  { %v190_v50 = vadd.f32 %v189_v49, %v116_v47 }
 0x111   :  { %v191_v51 = vpop.f32.mrf.mxu0 }
 0x112   :  { %v218_v52 = vmax.f32 %v190_v50, 0.0  ;;  %v192_v53 = vadd.f32 %v191_v51, %v120_v48 }
 0x113   :  { %v195_v54 = vpop.f32.mrf.mxu0 }
 0x114   :  { %228 = vst [vmem:[#allocation5] sm:$0xff] %v218_v52  ;;  %v219_v55 = vmax.f32 %v192_v53, 0.0  ;;  %v196_v56 = vadd.f32 %v195_v54, %v116_v47 }
 0x115   :  { %v197_v57 = vpop.f32.mrf.mxu0 }
 0x116   :  { %229 = vst [vmem:[#allocation5 + $0x8] sm:$0xff] %v219_v55  ;;  %v220_v58 = vmax.f32 %v196_v56, 0.0  ;;  %v198_v59 = vadd.f32 %v197_v57, %v120_v48  ;;  %341 = vmatprep.mubr.f32.mxu1 %v219_v55 }
 0x117   :  { %v201_v60 = vpop.f32.mrf.mxu0  ;;  %342 = vmatmul.mubr.f32.vlgmr.msra.gmra.mxu1 %v218_v52 }
 0x118   :  { %230 = vst [vmem:[#allocation5 + $0x10] sm:$0xff] %v220_v58  ;;  %v221_v61 = vmax.f32 %v198_v59, 0.0  ;;  %v202_v62 = vadd.f32 %v201_v60, %v116_v47 }
 0x119   :  { %v203_v63 = vpop.f32.mrf.mxu0 }
 0x11a   :  { %231 = vst [vmem:[#allocation5 + $0x18] sm:$0xff] %v221_v61  ;;  %v222_v0 = vmax.f32 %v202_v62, 0.0  ;;  %v204_v1 = vadd.f32 %v203_v63, %v120_v48  ;;  %346 = vmatprep.mubr.f32.mxu1 %v221_v61 }
 0x11b   :  { %v207_v2 = vpop.f32.mrf.mxu0  ;;  %347 = vmatmul.mubr.f32.gmra.mxu1 %v220_v58 }
 0x11c   :  { %232 = vst [vmem:[#allocation5 + $0x20] sm:$0xff] %v222_v0  ;;  %v223_v3 = vmax.f32 %v204_v1, 0.0  ;;  %v208_v4 = vadd.f32 %v207_v2, %v116_v47 }
 0x11d   :  { %v209_v5 = vpop.f32.mrf.mxu0 }
 0x11e   :  { %233 = vst [vmem:[#allocation5 + $0x28] sm:$0xff] %v223_v3  ;;  %v224_v6 = vmax.f32 %v208_v4, 0.0  ;;  %v210_v7 = vadd.f32 %v209_v5, %v120_v48  ;;  %351 = vmatprep.mubr.f32.mxu1 %v223_v3 }
 0x11f   :  { %v213_v8 = vpop.f32.mrf.mxu0  ;;  %352 = vmatmul.mubr.f32.gmra.mxu1 %v222_v0 }
 0x120   :  { %234 = vst [vmem:[#allocation5 + $0x30] sm:$0xff] %v224_v6  ;;  %v225_v9 = vmax.f32 %v210_v7, 0.0  ;;  %v214_v10 = vadd.f32 %v213_v8, %v116_v47 }
 0x121   :  { %v215_v11 = vpop.f32.mrf.mxu0 }
 0x122   :  { %235 = vst [vmem:[#allocation5 + $0x38] sm:$0xff] %v225_v9  ;;  %v226_v12 = vmax.f32 %v214_v10, 0.0  ;;  %v216_v13 = vadd.f32 %v215_v11, %v120_v48  ;;  %356 = vmatprep.mubr.f32.mxu1 %v225_v9 }
 0x123   :  { %357 = vmatmul.mubr.f32.gmra.mxu1 %v224_v6 }
 0x124   :  { %236 = vst [vmem:[#allocation5 + $0x40] sm:$0xff] %v226_v12  ;;  %v227_v14 = vmax.f32 %v216_v13, 0.0 }
 0x126   :  { %237 = vst [vmem:[#allocation5 + $0x48] sm:$0xff] %v227_v14  ;;  %361 = vmatprep.mubr.f32.mxu1 %v227_v14 }
 0x127   :  { %362 = vmatmul.mubr.f32.gmra.mxu1 %v226_v12 }
 0x128   :  { %476 = shalt.err (!%p473_p9)
}
 0x129   :  { %385 = dma.vmem_to_hbm [thread:$0]  %s380_s3, 1280, %s693_s6, [#allocation4], %s490_s24, %s490_s24, %s491_s25  }
 0x12a   :  { %v393_v16 = vld [vmem:[%s691_s4] ss:$0 sm:$0xff] }
 0x1d7   :  { %v426_v15 = vpop.f32.mrf.mxu1 }
 0x1d9   :  { %v427_v17 = vpop.f32.mrf.mxu1 }
 0x1da   :  { %v428_v18 = vadd.f32 %v427_v17, %v426_v15 }
 0x1db   :  { %v429_v19 = vpop.f32.mrf.mxu1 }
 0x1dc   :  { %v344_v20 = vadd.f32 %v428_v18, %v393_v16 }
 0x1dd   :  { %v430_v21 = vpop.f32.mrf.mxu1 }
 0x1de   :  { %367 = vst [vmem:[%s692_s5] sm:$0xff] %v344_v20  ;;  %v431_v22 = vadd.f32 %v430_v21, %v429_v19 }
 0x1df   :  { %v432_v23 = vpop.f32.mrf.mxu1 }
 0x1e0   :  { %v349_v24 = vadd.f32 %v431_v22, %v393_v16 }
 0x1e1   :  { %v433_v25 = vpop.f32.mrf.mxu1 }
 0x1e2   :  { %368 = vst [vmem:[%s692_s5 + $0x8] sm:$0xff] %v349_v24  ;;  %v434_v26 = vadd.f32 %v433_v25, %v432_v23 }
 0x1e3   :  { %v435_v27 = vpop.f32.mrf.mxu1 }
 0x1e4   :  { %v354_v28 = vadd.f32 %v434_v26, %v393_v16 }
 0x1e5   :  { %v436_v29 = vpop.f32.mrf.mxu1 }
 0x1e6   :  { %369 = vst [vmem:[%s692_s5 + $0x10] sm:$0xff] %v354_v28  ;;  %v437_v30 = vadd.f32 %v436_v29, %v435_v27 }
 0x1e7   :  { %v438_v31 = vpop.f32.mrf.mxu1 }
 0x1e8   :  { %v359_v32 = vadd.f32 %v437_v30, %v393_v16 }
 0x1e9   :  { %v439_v33 = vpop.f32.mrf.mxu1 }
 0x1ea   :  { %370 = vst [vmem:[%s692_s5 + $0x18] sm:$0xff] %v359_v32  ;;  %v440_v34 = vadd.f32 %v439_v33, %v438_v31 }
 0x1ec   :  { %v364_v35 = vadd.f32 %v440_v34, %v393_v16 }
 0x1ee   :  { %371 = vst [vmem:[%s692_s5 + $0x20] sm:$0xff] %v364_v35 }
 0x1ef   :  { %487 = dma.done.wait [#allocation4], 1280  }
 0x1f0   :  { %488 = vsyncadd [#allocation4], 4294966016 }
 0x1f1   :  { %391 = vsyncpa [#allocation3], 1 }
 0x1f2   :  { %392 = vsyncpa [#allocation4], 1 }

</bundles_post_ra>
